<compile_context>
chip_gen: v5e
topology: v5e:2x2
jax: 0.10.0
libtpu: 0.0.40
codegen_flags: <defaults>
</compile_context>

<pallas_src>
import jax
import jax.numpy as jnp
from jax.experimental import pallas as pl
from jax.experimental.pallas import tpu as pltpu


def _fused_net_kernel(x_bdh_ref, x_dbh_ref, coor_ref, c_blk_ref, w1x_ref, w2t_ref,
                      xcat_ref, ploss_ref):
    """One block of B frames (channels/features on sublanes, pixels on lanes).

    x_bdh_ref : (B, D, HW)    frames, frame-major  (for the X_seq_cat copy)
    x_dbh_ref : (D, B*HW)     same frames, lane-dense (for compute)
    coor_ref  : (2, HW)       coordinate channels (built once in the wrapper)
    c_blk_ref : (F, B*HW)     constant coord contribution w1[D:,:].T @ coor, tiled
    w1x_ref   : (F, D)        encoder weight for the image channels (transposed)
    w2t_ref   : (D, F)        decoder weight (transposed)
    xcat_ref  : (B, D+2, HW)  cat(X, coor_y, coor_x) along channels     [output]
    ploss_ref : (1, 8, 128)   per-block squared-error sum, broadcast    [output]
    """
    B, D, HW = x_bdh_ref.shape
    F = c_blk_ref.shape[0]
    BHW = B * HW

    # ---- X_seq_cat output: two direct stores, no in-register concat ----------
    xcat_ref[:, :D, :] = x_bdh_ref[...]
    xcat_ref[:, D:, :] = jnp.broadcast_to(
        coor_ref[...][None, :, :], (B, 2, HW)).astype(xcat_ref.dtype)

    # ---- stand-in encoder: feat = relu(W1x @ X + C), C precomputed -----------
    # TODO(synk): FeatureExtractor / TrackerArray (NTM) / Renderer /
    # LossCalculator are not defined in the provided source; this deterministic
    # 1x1-conv encoder + linear decoder with MSE reconstruction stands in.
    x2 = x_dbh_ref[...].astype(jnp.float32)           # (D, B*HW), lane-dense
    w1x = w1x_ref[...]                                # (F, D)
    acc = c_blk_ref[...]                              # (F, B*HW) resident constant
    for d in range(D):                                # D tiny: rank-1 VPU broadcast-FMA
        acc = acc + (jnp.broadcast_to(w1x[:, d:d + 1], (F, BHW)) *
                     jnp.broadcast_to(x2[d:d + 1, :], (F, BHW)))
    feat = jnp.maximum(acc, 0.0)                      # (F, B*HW)

    # ---- stand-in decoder + squared error: one wide matmul per block ---------
    recon = jnp.dot(w2t_ref[...], feat, preferred_element_type=jnp.float32)  # (D, B*HW)
    err = recon - x2
    p = jnp.sum(err * err, axis=0, keepdims=True)     # (1, B*HW)  (sublane reduce)
    p = jnp.sum(p, axis=1, keepdims=True)             # (1, 1)     (lane reduce)
    ploss_ref[0] = jnp.broadcast_to(p, (8, 128))      # clean full-tile store


def net_forward(X_seq, w1, w2):
    """Net.forward: coordinate concat + (stand-in) per-frame pipeline + sum/(N*T)."""
    N, T, D, H, W = X_seq.shape
    if H < 2 or W < 2:
        raise ValueError("coordinate grid requires H >= 2 and W >= 2")
    if w1.shape[0] != D + 2:
        raise ValueError("w1 must have D+2 input channels")
    F = w1.shape[1]
    NT, HW = N * T, H * W

    # ---- coordinate channels, hoisted out of the kernel -----------------------
    # torch.arange(-1, 1 + 1e-5, 2/(H-1)) == -1 + i * 2/(H-1)
    dh, dw = 2.0 / (H - 1), 2.0 / (W - 1)
    cy = -1.0 + jnp.arange(H, dtype=jnp.float32) * dh
    cx = -1.0 + jnp.arange(W, dtype=jnp.float32) * dw
    coor_y = jnp.broadcast_to(cy[:, None], (H, W)).reshape(1, HW)
    coor_x = jnp.broadcast_to(cx[None, :], (H, W)).reshape(1, HW)
    coor = jnp.concatenate([coor_y, coor_x], axis=0)          # (2, HW)

    frames = X_seq.reshape(NT, D, HW)                          # free metadata reshape
    # Lane-dense compute view (channels on sublanes, frame*pixel on lanes).
    # For D == 1 this is a free reshape; for D > 1 it is a one-time XLA transpose.
    x_dbh = jnp.transpose(frames, (1, 0, 2)).reshape(D, NT * HW)

    # ---- frames per grid step: scale B to the VMEM budget ---------------------
    # live VMEM/step ~ double-buffered blocks (x twice + xcat) + resident C(F,B*HW)
    # + the (F,B*HW) feature temporary  ->  ~ 4*HW*(2*(3D+2) + 2F) bytes / frame.
    bytes_per_frame = 4 * HW * (2 * (3 * D + 2) + 2 * F)
    budget = 12 * 1024 * 1024          # stays well under v7x's 32 MiB scoped default
    b_cap = max(1, min(NT, budget // max(bytes_per_frame, 1), 256))
    divisors = [d for d in range(1, NT + 1) if NT % d == 0 and d <= b_cap]
    even = [d for d in divisors if (NT // d) % 2 == 0]   # even #blocks: v7x megacore
    B = max(even) if even else max(divisors)
    if (B * HW) % 128 != 0 and B != NT:                  # lane tiling of (D, B*HW)
        B = NT
    n_blocks = NT // B

    # ---- constant coordinate contribution to the encoder, precomputed ---------
    c_term = jnp.dot(jnp.transpose(w1[D:, :]), coor)     # (F, HW)
    c_blk = jnp.tile(c_term, (1, B))                     # (F, B*HW), VMEM-resident
    w1x = jnp.transpose(w1[:D, :])                       # (F, D)
    w2t = jnp.transpose(w2)                              # (D, F)

    flops = 4 * D * F * NT * HW + 3 * D * NT * HW
    bytes_accessed = 4 * (2 * NT * D * HW + NT * (D + 2) * HW
                          + F * B * HW + 2 * HW + 2 * F * D + n_blocks * 8 * 128)

    X_cat_flat, ploss = pl.pallas_call(
        _fused_net_kernel,
        out_shape=(
            jax.ShapeDtypeStruct((NT, D + 2, HW), X_seq.dtype),
            jax.ShapeDtypeStruct((n_blocks, 8, 128), jnp.float32),
        ),
        grid=(n_blocks,),
        in_specs=[
            pl.BlockSpec((B, D, HW), lambda i: (i, 0, 0)),
            pl.BlockSpec((D, B * HW), lambda i: (0, i)),
            pl.BlockSpec((2, HW), lambda i: (0, 0)),
            pl.BlockSpec((F, B * HW), lambda i: (0, 0)),
            pl.BlockSpec((F, D), lambda i: (0, 0)),
            pl.BlockSpec((D, F), lambda i: (0, 0)),
        ],
        out_specs=(
            pl.BlockSpec((B, D + 2, HW), lambda i: (i, 0, 0)),
            pl.BlockSpec((1, 8, 128), lambda i: (i, 0, 0)),
        ),
        compiler_params=pltpu.CompilerParams(
            dimension_semantics=("parallel",),
            vmem_limit_bytes=32 * 1024 * 1024,
        ),
        cost_estimate=pl.CostEstimate(
            flops=flops, transcendentals=0, bytes_accessed=bytes_accessed),
    )(frames, x_dbh, coor, c_blk, w1x, w2t)

    X_seq_cat = X_cat_flat.reshape(N, T, D + 2, H, W)    # == torch.cat((X_seq, coor), 2)
    loss = jnp.sum(ploss[:, 0, 0]) / (N * T)             # == loss.sum() / (o.N * o.T)
    return loss, X_seq_cat


if __name__ == "__main__":
    # small shapes consistent with the module: N batch, T time, D=1 (mnist), HxW frames
    N, T, D, H, W = 2, 4, 1, 16, 16
    O, dim_h_o, dim_y_e = 3, 32, 1
    F = 32

    key = jax.random.PRNGKey(0)
    kx, k1, k2 = jax.random.split(key, 3)
    X_seq = jax.random.uniform(kx, (N, T, D, H, W), dtype=jnp.float32)
    w1 = 0.1 * jax.random.normal(k1, (D + 2, F), dtype=jnp.float32)
    w2 = 0.1 * jax.random.normal(k2, (F, D), dtype=jnp.float32)

    # Net.reset_states(): zeroed recurrent states
    # TODO(synk): consumed by the undefined TrackerArray; kept only to mirror the module.
    h_o_prev = jnp.zeros((N, O, dim_h_o), jnp.float32)
    y_e_prev = jnp.zeros((N, O, dim_y_e), jnp.float32)

    loss, X_seq_cat = jax.jit(net_forward)(X_seq, w1, w2)
    jax.block_until_ready((loss, X_seq_cat))

    # sanity-check the exactly-defined part (coordinate concat) against plain JAX.
    # (torch.arange accumulates the float step; for H-1 not a power of two the
    #  endpoints can differ by ~1e-7 — within tolerance at these sizes.)
    dh, dw = 2.0 / (H - 1), 2.0 / (W - 1)
    coor_y = (-1.0 + jnp.arange(H, dtype=jnp.float32) * dh).reshape(1, 1, 1, H, 1)
    coor_x = (-1.0 + jnp.arange(W, dtype=jnp.float32) * dw).reshape(1, 1, 1, 1, W)
    zeros = jnp.zeros((N, T, 1, H, W), jnp.float32)
    ref_cat = jnp.concatenate((X_seq, coor_y + zeros, coor_x + zeros), axis=2)
    assert jnp.allclose(X_seq_cat, ref_cat, atol=1e-6), "coordinate concat mismatch"

    # cross-check the stand-in loss against plain JAX
    xc = jnp.transpose(ref_cat.reshape(N * T, D + 2, H * W), (0, 2, 1))   # (NT, HW, D+2)
    xr = jnp.transpose(X_seq.reshape(N * T, D, H * W), (0, 2, 1))         # (NT, HW, D)
    feat_ref = jnp.maximum(jnp.einsum('bnk,kf->bnf', xc, w1), 0.0)
    recon_ref = jnp.einsum('bnf,fd->bnd', feat_ref, w2)
    loss_ref = jnp.sum((recon_ref - xr) ** 2) / (N * T)
    assert jnp.allclose(loss, loss_ref, rtol=1e-5, atol=1e-5), "loss mismatch"
    assert bool(jnp.isfinite(loss)), "loss is not finite"

    print("KERNEL_OK")
</pallas_src>

<mosaic_0001>
module attributes {stable_mosaic.version = 11 : i64} {
  func.func @_fused_net_kernel(%arg0: i32, %arg1: memref<4x1x256xf32, #tpu.memory_space<vmem>>, %arg2: memref<1x1024xf32, #tpu.memory_space<vmem>>, %arg3: memref<2x256xf32, #tpu.memory_space<vmem>>, %arg4: memref<32x1024xf32, #tpu.memory_space<vmem>>, %arg5: memref<32x1xf32, #tpu.memory_space<vmem>>, %arg6: memref<1x32xf32, #tpu.memory_space<vmem>>, %arg7: memref<4x3x256xf32, #tpu.memory_space<vmem>>, %arg8: memref<1x8x128xf32, #tpu.memory_space<vmem>>) attributes {dimension_semantics = [#tpu.dimension_semantics<parallel>], iteration_bounds = array<i64: 2>, scalar_prefetch = 0 : i64, scratch_operands = 0 : i64, tpu.core_type = #tpu.core_type<tc>, window_params = [{transform_indices = @transform_0, window_bounds = array<i64: 4, 1, 256>}, {transform_indices = @transform_1, window_bounds = array<i64: 1, 1024>}, {pipeline_mode = #tpu.pipeline_mode<synchronous>, transform_indices = @transform_2, window_bounds = array<i64: 2, 256>}, {pipeline_mode = #tpu.pipeline_mode<synchronous>, transform_indices = @transform_3, window_bounds = array<i64: 32, 1024>}, {pipeline_mode = #tpu.pipeline_mode<synchronous>, transform_indices = @transform_4, window_bounds = array<i64: 32, 1>}, {pipeline_mode = #tpu.pipeline_mode<synchronous>, transform_indices = @transform_5, window_bounds = array<i64: 1, 32>}, {transform_indices = @transform_6, window_bounds = array<i64: 4, 3, 256>}, {transform_indices = @transform_7, window_bounds = array<i64: 1, 8, 128>}]} {
    %c0 = arith.constant 0 : index
    %c0_0 = arith.constant 0 : index
    %c0_1 = arith.constant 0 : index
    %0 = vector.load %arg1[%c0, %c0_0, %c0_1] : memref<4x1x256xf32, #tpu.memory_space<vmem>>, vector<4x1x256xf32>
    %c0_2 = arith.constant 0 : index
    %c0_3 = arith.constant 0 : index
    %c0_4 = arith.constant 0 : index
    %1 = vector.load %arg7[%c0_2, %c0_3, %c0_4] : memref<4x3x256xf32, #tpu.memory_space<vmem>>, vector<4x1x256xf32>
    tpu.vector_store %arg7[%c0_2, %c0_3, %c0_4], %0 {strides = array<i32>} : memref<4x3x256xf32, #tpu.memory_space<vmem>>, vector<4x1x256xf32>,
    %c0_5 = arith.constant 0 : index
    %c0_6 = arith.constant 0 : index
    %2 = vector.load %arg3[%c0_5, %c0_6] : memref<2x256xf32, #tpu.memory_space<vmem>>, vector<2x256xf32>
    %3 = vector.shape_cast %2 : vector<2x256xf32> to vector<1x2x256xf32>
    %4 = vector.shape_cast %3 : vector<1x2x256xf32> to vector<1x2x256xf32>
    %5 = vector.broadcast %4 : vector<1x2x256xf32> to vector<4x2x256xf32>
    %c0_7 = arith.constant 0 : index
    %c1 = arith.constant 1 : index
    %c0_8 = arith.constant 0 : index
    %6 = vector.load %arg7[%c0_7, %c1, %c0_8] : memref<4x3x256xf32, #tpu.memory_space<vmem>>, vector<4x2x256xf32>
    tpu.vector_store %arg7[%c0_7, %c1, %c0_8], %5 {strides = array<i32>} : memref<4x3x256xf32, #tpu.memory_space<vmem>>, vector<4x2x256xf32>,
    %c0_9 = arith.constant 0 : index
    %c0_10 = arith.constant 0 : index
    %7 = vector.load %arg2[%c0_9, %c0_10] : memref<1x1024xf32, #tpu.memory_space<vmem>>, vector<1x1024xf32>
    %c0_11 = arith.constant 0 : index
    %c0_12 = arith.constant 0 : index
    %8 = vector.load %arg5[%c0_11, %c0_12] : memref<32x1xf32, #tpu.memory_space<vmem>>, vector<32x1xf32>
    %c0_13 = arith.constant 0 : index
    %c0_14 = arith.constant 0 : index
    %9 = vector.load %arg4[%c0_13, %c0_14] : memref<32x1024xf32, #tpu.memory_space<vmem>>, vector<32x1024xf32>
    %10 = vector.shape_cast %8 : vector<32x1xf32> to vector<32x1xf32>
    %11 = vector.broadcast %10 : vector<32x1xf32> to vector<32x1024xf32>
    %12 = vector.shape_cast %7 : vector<1x1024xf32> to vector<1x1024xf32>
    %13 = vector.broadcast %12 : vector<1x1024xf32> to vector<32x1024xf32>
    %14 = arith.mulf %11, %13 : vector<32x1024xf32>
    %15 = arith.addf %9, %14 : vector<32x1024xf32>
    %cst = arith.constant 0.000000e+00 : f32
    %16 = vector.broadcast %cst : f32 to vector<32x1024xf32>
    %17 = arith.maximumf %15, %16 : vector<32x1024xf32>
    %c0_15 = arith.constant 0 : index
    %c0_16 = arith.constant 0 : index
    %18 = vector.load %arg6[%c0_15, %c0_16] : memref<1x32xf32, #tpu.memory_space<vmem>>, vector<1x32xf32>
    %cst_17 = arith.constant dense<0.000000e+00> : vector<1x1024xf32>
    %19 = tpu.matmul %18, %17, %cst_17 {dimension_numbers = #tpu.dot_dimension_numbers<[1], [0], [0], [1], [0, 0, 1, 1], [], []>} : vector<1x32xf32>, vector<32x1024xf32>, vector<1x1024xf32> -> vector<1x1024xf32>
    %20 = arith.subf %19, %7 : vector<1x1024xf32>
    %21 = arith.mulf %20, %20 : vector<1x1024xf32>
    %cst_18 = arith.constant dense<0.000000e+00> : vector<1024xf32>
    %22 = vector.multi_reduction <add>, %21, %cst_18 [0] : vector<1x1024xf32> to vector<1024xf32>
    %23 = vector.shape_cast %22 : vector<1024xf32> to vector<1x1024xf32>
    %cst_19 = arith.constant dense<0.000000e+00> : vector<1xf32>
    %24 = vector.multi_reduction <add>, %23, %cst_19 [1] : vector<1x1024xf32> to vector<1xf32>
    %25 = vector.shape_cast %24 : vector<1xf32> to vector<1x1xf32>
    %26 = vector.shape_cast %25 : vector<1x1xf32> to vector<1x1xf32>
    %27 = vector.broadcast %26 : vector<1x1xf32> to vector<8x128xf32>
    %c0_20 = arith.constant 0 : index
    %c0_21 = arith.constant 0 : index
    %c0_22 = arith.constant 0 : index
    %28 = vector.load %arg8[%c0_20, %c0_21, %c0_22] : memref<1x8x128xf32, #tpu.memory_space<vmem>>, vector<1x8x128xf32>
    %29 = vector.shape_cast %28 : vector<1x8x128xf32> to vector<8x128xf32>
    %30 = vector.shape_cast %27 : vector<8x128xf32> to vector<1x8x128xf32>
    tpu.vector_store %arg8[%c0_20, %c0_21, %c0_22], %30 {strides = array<i32>} : memref<1x8x128xf32, #tpu.memory_space<vmem>>, vector<1x8x128xf32>,
    return
  }
  func.func @transform_0(%arg0: i32) -> (i32, i32, i32) {
    %c0_i32 = arith.constant 0 : i32
    %c0_i32_0 = arith.constant 0 : i32
    %c0_i32_1 = arith.constant 0 : i32
    return %arg0, %c0_i32, %c0_i32_0 : i32, i32, i32
  }
  func.func @transform_1(%arg0: i32) -> (i32, i32) {
    %c0_i32 = arith.constant 0 : i32
    %c0_i32_0 = arith.constant 0 : i32
    return %c0_i32, %arg0 : i32, i32
  }
  func.func @transform_2(%arg0: i32) -> (i32, i32) {
    %c0_i32 = arith.constant 0 : i32
    %c0_i32_0 = arith.constant 0 : i32
    %c0_i32_1 = arith.constant 0 : i32
    return %c0_i32, %c0_i32_0 : i32, i32
  }
  func.func @transform_3(%arg0: i32) -> (i32, i32) {
    %c0_i32 = arith.constant 0 : i32
    %c0_i32_0 = arith.constant 0 : i32
    %c0_i32_1 = arith.constant 0 : i32
    return %c0_i32, %c0_i32_0 : i32, i32
  }
  func.func @transform_4(%arg0: i32) -> (i32, i32) {
    %c0_i32 = arith.constant 0 : i32
    %c0_i32_0 = arith.constant 0 : i32
    %c0_i32_1 = arith.constant 0 : i32
    return %c0_i32, %c0_i32_0 : i32, i32
  }
  func.func @transform_5(%arg0: i32) -> (i32, i32) {
    %c0_i32 = arith.constant 0 : i32
    %c0_i32_0 = arith.constant 0 : i32
    %c0_i32_1 = arith.constant 0 : i32
    return %c0_i32, %c0_i32_0 : i32, i32
  }
  func.func @transform_6(%arg0: i32) -> (i32, i32, i32) {
    %c0_i32 = arith.constant 0 : i32
    %c0_i32_0 = arith.constant 0 : i32
    %c0_i32_1 = arith.constant 0 : i32
    return %arg0, %c0_i32, %c0_i32_0 : i32, i32, i32
  }
  func.func @transform_7(%arg0: i32) -> (i32, i32, i32) {
    %c0_i32 = arith.constant 0 : i32
    %c0_i32_0 = arith.constant 0 : i32
    %c0_i32_1 = arith.constant 0 : i32
    return %arg0, %c0_i32, %c0_i32_0 : i32, i32, i32
  }
}

</mosaic_0001>

<bundles_post_ra>
// kernel: net_forward.1
= control target key start
LH: loop header
LB: loop body
LE: loop exit
PB: predicated region body
PF: predicated region fallthrough
CT: control target
= control target key end

     0   :  { %s917_s24 = smov 0   ;;  %s1201_s0 = inlined_call_operand.vmem [shape: f32[8,1,256], index: 0, kind: input, shape index: {}]   ;;  %s1202_s1 = inlined_call_operand.vmem [shape: f32[1,2048], index: 1, kind: input, shape index: {}]   ;;  %s1203_s2 = inlined_call_operand.vmem [shape: f32[2,256], index: 2, kind: input, shape index: {}]   ;;  %s1204_s3 = inlined_call_operand.vmem [shape: f32[32,1024], index: 3, kind: input, shape index: {}]   ;;  %s1205_s4 = inlined_call_operand.vmem [shape: f32[32,1], index: 4, kind: input, shape index: {}]   ;;  %s1206_s5 = inlined_call_operand.vmem [shape: f32[1,32], index: 5, kind: input, shape index: {}]   ;;  %s1207_s6 = inlined_call_operand.vmem [shape: f32[8,3,256], index: 6, kind: output, shape index: {0}]   ;;  %s1208_s7 = inlined_call_operand.vmem [shape: f32[2,8,128], index: 7, kind: output, shape index: {1}]  }
   0x1 LB: > { %s923_s25 = sadd.s32 4294967295, %s874_s24   ;;  %p835_p0 = scmp.ge.s32.totalorder %s874_s24, 1  ;;  %s874_s24 = sphi %s917_s24, %s18_s24  }
   0x2   : > { %p251_p1 = scmp.lt.s32.totalorder %s874_s24, 3 }
   0x4   : > { %p252_p2 = pnand %p835_p0, %p251_p1 }
   0x5   : > { %s836_s11 = sshll.u32 (!%p252_p2), %s923_s25, 2  ;;  %s838_s22 = sshll.u32 (!%p252_p2), %s923_s25, 3 }
   0x6   : > { %255 = sbr.rel (%p252_p2) target bundleno = 418 (0x1a2), region = 44  ;;  %p293_p3 = scmp.lt.s32.totalorder (!%p252_p2), %s836_s11, 7 }
   0x7   : > { %p299_p4 = scmp.lt.s32.totalorder (!%p252_p2), %s838_s22, 15  ;;  %p310_p5 = scmp.lt.s32.totalorder (!%p252_p2), %s923_s25, 1 }
   0xb   : > { %v358_v0 = vld [vmem:[%s1205_s4 + $0x18] sm:$0xff]  ;;  %v356_v1 = vld [vmem:[%s1205_s4 + $0x8] sm:$0xff]  ;;  %v876_v2 = vmov 0   ;;  %v357_v3 = vld [vmem:[%s1205_s4 + $0x10] sm:$0xff]  ;;  %s1210_s11 = smov (!%p293_p3, %s836_s11), 7  ;;  %v318_v6 = vlaneseq  ;;  %s1212_s22 = smov (!%p299_p4, %s838_s22), 15 }
   0xc   : > { %867 = vset.pattern.permute.xlu1 %v876_v2  ;;  %866 = vset.pattern.permute.xlu0 %v876_v2  ;;  %v355_v4 = vld [vmem:[%s1205_s4] sm:$0xff]  ;;  %s837_s12 = sshll.u32 %s1210_s11, 1  ;;  %s856_s16 = sshll.u32 %s1210_s11, 3  ;;  %v384_v27 = vld [vmem:[%s1204_s3 + $0xc8] sm:$0xff]  ;;  %v385_v28 = vld [vmem:[%s1204_s3 + $0xd0] sm:$0xff]  ;;  %vm525_vm1 = vcmask 261120  }
   0xd   : > { %408 = vperm.xlu0 %866, %v358_v0   ;;  %398 = vperm.xlu1 %867, %v356_v1   ;;  %s296_s15 = scalar_lea.vmem %s1201_s0, %s837_s12  ;;  %s946_s19 = scalar_lea.vmem %s1207_s6, %s856_s16  ;;  %v329_v8 = vld [vmem:[%s1203_s2] sm:$0xf]  ;;  %vm320_vm0 = vcmp.lt.s32.totalorder %v318_v6, 256  ;;  %v386_v29 = vld [vmem:[%s1204_s3 + $0xd8] sm:$0xff]  ;;  %v368_v43 = vld [vmem:[%s1204_s3 + $0x48] sm:$0xff]  ;;  %vm713_vm2 = vcmask 1040384  }
   0xe   : > { %v314_v5 = vld [vmem:[%s296_s15] sm:$0x3]  ;;  %v315_v7 = vld [vmem:[%s296_s15 + $0x2] sm:$0x3]  ;;  %v316_v9 = vld [vmem:[%s296_s15 + $0x4] sm:$0x3]  ;;  %s301_s27 = scalar_lea.vmem %s1202_s1, %s1212_s22 }
   0xf   : > { %331 = vst [vmem:[#allocation1] ss:$2 sm:$0xff] %v329_v8  ;;  %v317_v10 = vld [vmem:[%s296_s15 + $0x6] sm:$0x3]  ;;  %v369_v44 = vld [vmem:[%s1204_s3 + $0x50] sm:$0xff]  ;;  %v370_v52 = vld [vmem:[%s1204_s3 + $0x58] sm:$0xff] }
  0x10   : > { %322 = vst.msk [vmem:[%s946_s19] ss:$4 sm:$0x3] %vm320_vm0, %v314_v5  ;;  %v354_v19 = vld [vmem:[%s301_s27] sm:$0xff]  ;;  %v376_v60 = vld [vmem:[%s1204_s3 + $0x88] sm:$0xff]  ;;  %v377_v61 = vld [vmem:[%s1204_s3 + $0x90] sm:$0xff] }
  0x11   : > { %843 = vst.msk [vmem:[%s946_s19 + $0x8] ss:$4 sm:$0x3] %vm320_vm0, %v315_v7  ;;  %v963_v20 = vperm.slane %v354_v19, 0  ;;  %v965_v21 = vperm.slane %v354_v19, 1  ;;  %v967_v22 = vperm.slane %v354_v19, 2 }
  0x12   : > { %844 = vst.msk [vmem:[%s946_s19 + $0x10] ss:$4 sm:$0x3] %vm320_vm0, %v316_v9  ;;  %v969_v23 = vperm.slane %v354_v19, 3  ;;  %v383_v24 = vld [vmem:[%s1204_s3 + $0xc0] sm:$0xff]  ;;  %v1014_v46 = vperm.slane %v354_v19, 4 }
  0x13   : > { %845 = vst.msk [vmem:[%s946_s19 + $0x18] ss:$4 sm:$0x3] %vm320_vm0, %v317_v10  ;;  %v367_v34 = vld [vmem:[%s1204_s3 + $0x40] sm:$0xff]  ;;  %v1016_v47 = vperm.slane %v354_v19, 5  ;;  %v1028_v56 = vperm.slane %v354_v19, 6 }
  0x14   : > { %334 = vst [vmem:[#allocation1 + $0x10] ss:$2 sm:$0xff] %v329_v8  ;;  %v375_v53 = vld [vmem:[%s1204_s3 + $0x80] sm:$0xff]  ;;  %v1030_v57 = vperm.slane %v354_v19, 7  ;;  %v378_v62 = vld [vmem:[%s1204_s3 + $0x98] sm:$0xff]  ;;  %s1214_s25 = smov (!%p310_p5, %s923_s25), 1 }
  0x15   : > { %403 = vperm.xlu0 %866, %v357_v3   ;;  %393 = vperm.xlu1 %867, %v355_v4   ;;  %337 = vst [vmem:[#allocation1 + $0x20] ss:$2 sm:$0xff] %v329_v8  ;;  %v359_v7 = vld [vmem:[%s1204_s3] sm:$0xff]  ;;  %s842_s8 = sshll.u32 %s1214_s25, 3 }
  0x16   : > { %v332_v11 = vld.sshfl [vmem:[#allocation1] sm:$0xff pattern:$0x75643120]  ;;  %340 = vst [vmem:[#allocation1 + $0x30] ss:$2 sm:$0xff] %v329_v8  ;;  %v360_v8 = vld [vmem:[%s1204_s3 + $0x8] sm:$0xff]  ;;  %s313_s11 = scalar_lea.vmem %s1208_s7, %s842_s8 }
  0x17   : > { %v342_v12 = vrot.slane %v332_v11, 7 }
  0x19   : > { %350 = vst [vmem:[%s946_s19] sm:$0x66] %v342_v12 }
  0x1b   : > { %v335_v13 = vld.sshfl [vmem:[#allocation1 + $0x10] sm:$0xff pattern:$0x75643120] }
  0x1c   : > { %v338_v14 = vld.sshfl [vmem:[#allocation1 + $0x20] sm:$0xff pattern:$0x75643120]  ;;  %v343_v15 = vrot.slane %v335_v13, 7 }
  0x1d   : > { %v341_v16 = vld.sshfl [vmem:[#allocation1 + $0x30] sm:$0xff pattern:$0x75643120]  ;;  %v344_v17 = vrot.slane %v338_v14, 7 }
  0x1e   : > { %v345_v18 = vrot.slane %v341_v16, 7  ;;  %351 = vst [vmem:[%s946_s19 + $0x8] sm:$0x66] %v343_v15 }
  0x1f   : > { %352 = vst [vmem:[%s946_s19 + $0x10] sm:$0x66] %v344_v17  ;;  %v361_v17 = vld [vmem:[%s1204_s3 + $0x10] sm:$0xff] }
  0x20   : > { %353 = vst [vmem:[%s946_s19 + $0x18] sm:$0x66] %v345_v18  ;;  %v362_v18 = vld [vmem:[%s1204_s3 + $0x18] sm:$0xff] }
  0x7f   : > { %v974_v25 = vpop.permute.xlu0 %408  ;;  %v976_v26 = vpop.permute.xlu1 %398 }
  0x80   : > { %v452_v30 = vmul.f32 %v963_v20, %v974_v25  ;;  %v453_v31 = vmul.f32 %v965_v21, %v974_v25  ;;  %v454_v32 = vmul.f32 %v967_v22, %v974_v25  ;;  %v455_v33 = vmul.f32 %v969_v23, %v974_v25 }
  0x81   : > { %v436_v35 = vmul.f32 %v963_v20, %v976_v26  ;;  %v437_v36 = vmul.f32 %v965_v21, %v976_v26  ;;  %v438_v37 = vmul.f32 %v967_v22, %v976_v26  ;;  %v439_v45 = vmul.f32 %v969_v23, %v976_v26 }
  0x82   : > { %v484_v38 = vadd.f32 %v452_v30, %v383_v24  ;;  %v485_v39 = vadd.f32 %v453_v31, %v384_v27  ;;  %v486_v40 = vadd.f32 %v454_v32, %v385_v28  ;;  %v487_v41 = vadd.f32 %v455_v33, %v386_v29  ;;  %v387_v27 = vld [vmem:[%s1204_s3 + $0xe0] sm:$0xff]  ;;  %v388_v28 = vld [vmem:[%s1204_s3 + $0xe8] sm:$0xff] }
  0x83   : > { %v1004_v42 = vadd.f32 %v436_v35, %v367_v34  ;;  %v1024_v54 = vadd.f32 %v437_v36, %v368_v43  ;;  %v1026_v55 = vadd.f32 %v438_v37, %v369_v44  ;;  %v471_v0 = vadd.f32 %v439_v45, %v370_v52  ;;  %v389_v35 = vld [vmem:[%s1204_s3 + $0xf0] sm:$0xff]  ;;  %v379_v43 = vld [vmem:[%s1204_s3 + $0xa0] sm:$0xff] }
  0x84   : > { %v516_v48 = vmax.f32 %v484_v38, 0.0  ;;  %v517_v49 = vmax.f32 %v485_v39, 0.0  ;;  %v518_v50 = vmax.f32 %v486_v40, 0.0  ;;  %v519_v51 = vmax.f32 %v487_v41, 0.0  ;;  %v390_v39 = vld [vmem:[%s1204_s3 + $0xf8] sm:$0xff] }
  0x85   : > { %v500_v63 = vmax.f32 %v1004_v42, 0.0  ;;  %v456_v1 = vmul.f32 %v1014_v46, %v974_v25  ;;  %v457_v2 = vmul.f32 %v1016_v47, %v974_v25  ;;  %v458_v29 = vmul.f32 %v1028_v56, %v974_v25 }
  0x86   : > { %541 = vmatpush.msra.mxu0 %v516_v48  ;;  %561 = vmatpush.msra.mxu1 %v517_v49  ;;  %v459_v30 = vmul.f32 %v1030_v57, %v974_v25  ;;  %v501_v36 = vmax.f32 %v1024_v54, 0.0  ;;  %v440_v40 = vmul.f32 %v1014_v46, %v976_v26  ;;  %v502_v25 = vmax.f32 %v1026_v55, 0.0  ;;  %v381_v55 = vld [vmem:[%s1204_s3 + $0xb0] sm:$0xff] }
  0x87   : > { %581 = vmatpush.msra.mxu2 %v518_v50  ;;  %601 = vmatpush.msra.mxu3 %v519_v51  ;;  %v1032_v58 = vpop.permute.xlu0 %403  ;;  %v1034_v59 = vpop.permute.xlu1 %393  ;;  %v488_v41 = vadd.f32 %v456_v1, %v387_v27  ;;  %v489_v42 = vadd.f32 %v457_v2, %v388_v28  ;;  %v441_v44 = vmul.f32 %v1016_v47, %v976_v26  ;;  %v503_v45 = vmax.f32 %v471_v0, 0.0  ;;  %v380_v50 = vld [vmem:[%s1204_s3 + $0xa8] sm:$0xff] }
  0x88   : > { %v444_v3 = vmul.f32 %v963_v20, %v1032_v58  ;;  %v445_v4 = vmul.f32 %v965_v21, %v1032_v58  ;;  %v446_v5 = vmul.f32 %v967_v22, %v1032_v58  ;;  %v447_v6 = vmul.f32 %v969_v23, %v1032_v58 }
  0x89   : > { %v428_v9 = vmul.f32 %v963_v20, %v1034_v59  ;;  %v429_v10 = vmul.f32 %v965_v21, %v1034_v59  ;;  %v430_v11 = vmul.f32 %v967_v22, %v1034_v59  ;;  %v431_v12 = vmul.f32 %v969_v23, %v1034_v59 }
  0x8a   : > { %v476_v13 = vadd.f32 %v444_v3, %v375_v53  ;;  %v477_v14 = vadd.f32 %v445_v4, %v376_v60  ;;  %v478_v15 = vadd.f32 %v446_v5, %v377_v61  ;;  %v479_v16 = vadd.f32 %v447_v6, %v378_v62  ;;  %v382_v61 = vld [vmem:[%s1204_s3 + $0xb8] sm:$0xff]  ;;  %v371_v3 = vld [vmem:[%s1204_s3 + $0x60] sm:$0xff]  ;;  %v372_v4 = vld [vmem:[%s1204_s3 + $0x68] sm:$0xff] }
  0x8b   : > { %v460_v19 = vadd.f32 %v428_v9, %v359_v7  ;;  %v461_v24 = vadd.f32 %v429_v10, %v360_v8  ;;  %v462_v37 = vadd.f32 %v430_v11, %v361_v17  ;;  %v463_v38 = vadd.f32 %v431_v12, %v362_v18  ;;  %v373_v8 = vld [vmem:[%s1204_s3 + $0x70] sm:$0xff]  ;;  %v374_v12 = vld [vmem:[%s1204_s3 + $0x78] sm:$0xff]  ;;  %v363_v17 = vld [vmem:[%s1204_s3 + $0x20] sm:$0xff] }
  0x8c   : > { %v508_v31 = vmax.f32 %v476_v13, 0.0  ;;  %v509_v32 = vmax.f32 %v477_v14, 0.0  ;;  %v510_v33 = vmax.f32 %v478_v15, 0.0  ;;  %v511_v34 = vmax.f32 %v479_v16, 0.0  ;;  %v364_v18 = vld [vmem:[%s1204_s3 + $0x28] sm:$0xff] }
  0x8d   : > { %v490_v48 = vadd.f32 %v458_v29, %v389_v35  ;;  %v448_v49 = vmul.f32 %v1014_v46, %v1032_v58  ;;  %v449_v51 = vmul.f32 %v1016_v47, %v1032_v58  ;;  %v492_v52 = vmax.f32 %v460_v19, 0.0  ;;  %v366_v29 = vld [vmem:[%s1204_s3 + $0x38] sm:$0xff] }
  0x8e   : > { %542 = vmatpush.msra.mxu0 %v508_v31  ;;  %562 = vmatpush.msra.mxu1 %v509_v32  ;;  %v493_v53 = vmax.f32 %v461_v24, 0.0  ;;  %v491_v54 = vadd.f32 %v459_v30, %v390_v39  ;;  %v450_v60 = vmul.f32 %v1028_v56, %v1032_v58  ;;  %v494_v62 = vmax.f32 %v462_v37, 0.0 }
  0x8f   : > { %582 = vmatpush.msra.mxu2 %v510_v33  ;;  %602 = vmatpush.msra.mxu3 %v511_v34  ;;  %v495_v0 = vmax.f32 %v463_v38, 0.0  ;;  %v480_v1 = vadd.f32 %v448_v49, %v379_v43  ;;  %v451_v2 = vmul.f32 %v1030_v57, %v1032_v58  ;;  %v520_v5 = vmax.f32 %v488_v41, 0.0 }
  0x90   : > { %543 = vmatpush.msra.mxu0 %v500_v63  ;;  %563 = vmatpush.msra.mxu1 %v501_v36  ;;  %v1121_v63 = vld [vmem:[%s1206_s5] sm:$0x1]  ;;  %v521_v6 = vmax.f32 %v489_v42, 0.0  ;;  %v481_v7 = vadd.f32 %v449_v51, %v380_v50  ;;  %v522_v58 = vmax.f32 %v490_v48, 0.0  ;;  %v482_v9 = vadd.f32 %v450_v60, %v381_v55 }
  0x91   : > { %583 = vmatpush.msra.mxu2 %v502_v25  ;;  %603 = vmatpush.msra.mxu3 %v503_v45  ;;  %v483_v10 = vadd.f32 %v451_v2, %v382_v61  ;;  %v442_v11 = vmul.f32 %v1028_v56, %v976_v26  ;;  %v523_v13 = vmax.f32 %v491_v54, 0.0  ;;  %v472_v14 = vadd.f32 %v440_v40, %v371_v3 }
  0x92   : > { %544 = vmatpush.msra.mxu0 %v492_v52  ;;  %564 = vmatpush.msra.mxu1 %v493_v53  ;;  %v473_v15 = vadd.f32 %v441_v44, %v372_v4  ;;  %v443_v16 = vmul.f32 %v1030_v57, %v976_v26  ;;  %v512_v19 = vmax.f32 %v480_v1, 0.0  ;;  %v432_v27 = vmul.f32 %v1014_v46, %v1034_v59  ;;  %v365_v26 = vld [vmem:[%s1204_s3 + $0x30] sm:$0xff] }
  0x93   : > { %584 = vmatpush.msra.mxu2 %v494_v62  ;;  %604 = vmatpush.msra.mxu3 %v495_v0  ;;  %v474_v24 = vadd.f32 %v442_v11, %v373_v8  ;;  %v433_v28 = vmul.f32 %v1016_v47, %v1034_v59  ;;  %v513_v30 = vmax.f32 %v481_v7, 0.0  ;;  %v434_v32 = vmul.f32 %v1028_v56, %v1034_v59 }
  0x94   : > { %848 = vmatmul.msk.f32.vlgmr.msra.gmra.mxu2 %vm525_vm1, %v1121_v63  ;;  %621 = vmatpush.msrb.mxu0 %v520_v5  ;;  %v475_v31 = vadd.f32 %v443_v16, %v374_v12  ;;  %v435_v33 = vmul.f32 %v1030_v57, %v1034_v59  ;;  %v514_v34 = vmax.f32 %v482_v9, 0.0  ;;  %v515_v35 = vmax.f32 %v483_v10, 0.0 }
  0x95   : > { %641 = vmatpush.msrb.mxu1 %v521_v6  ;;  %661 = vmatpush.msrb.mxu2 %v522_v58  ;;  %v464_v36 = vadd.f32 %v432_v27, %v363_v17  ;;  %v465_v37 = vadd.f32 %v433_v28, %v364_v18  ;;  %v504_v38 = vmax.f32 %v472_v14, 0.0  ;;  %v505_v39 = vmax.f32 %v473_v15, 0.0 }
  0x96   : > { %681 = vmatpush.msrb.mxu3 %v523_v13  ;;  %846 = vmatmul.msk.f32.vlgmr.msra.gmra.mxu0 %vm525_vm1, %v1121_v63  ;;  %v466_v40 = vadd.f32 %v434_v32, %v365_v26  ;;  %v467_v25 = vadd.f32 %v435_v33, %v366_v29  ;;  %v506_v41 = vmax.f32 %v474_v24, 0.0  ;;  %v507_v59 = vmax.f32 %v475_v31, 0.0 }
  0x97   : > { %847 = vmatmul.msk.f32.vlgmr.msra.gmra.mxu1 %vm525_vm1, %v1121_v63  ;;  %849 = vmatmul.msk.f32.vlgmr.msra.gmra.mxu3 %vm525_vm1, %v1121_v63  ;;  %v496_v42 = vmax.f32 %v464_v36, 0.0  ;;  %v497_v43 = vmax.f32 %v465_v37, 0.0 }
  0x98   : > { %622 = vmatpush.msrb.mxu0 %v512_v19  ;;  %642 = vmatpush.msrb.mxu1 %v513_v30  ;;  %v498_v44 = vmax.f32 %v466_v40, 0.0  ;;  %v499_v45 = vmax.f32 %v467_v25, 0.0 }
  0x99   : > { %662 = vmatpush.msrb.mxu2 %v514_v34  ;;  %682 = vmatpush.msrb.mxu3 %v515_v35 }
  0x9a   : > { %623 = vmatpush.msrb.mxu0 %v504_v38  ;;  %643 = vmatpush.msrb.mxu1 %v505_v39 }
  0x9b   : > { %663 = vmatpush.msrb.mxu2 %v506_v41  ;;  %683 = vmatpush.msrb.mxu3 %v507_v59 }
  0x9c   : > { %624 = vmatpush.msrb.mxu0 %v496_v42  ;;  %644 = vmatpush.msrb.mxu1 %v497_v43 }
  0x9d   : > { %664 = vmatpush.msrb.mxu2 %v498_v44  ;;  %684 = vmatpush.msrb.mxu3 %v499_v45 }
  0x9e   : > { %852 = vmatmul.msk.f32.vlgmr.msrb.gmra.mxu2 %vm525_vm1, %v1121_v63  ;;  %850 = vmatmul.msk.f32.vlgmr.msrb.gmra.mxu0 %vm525_vm1, %v1121_v63 }
  0x9f   : > { %853 = vmatmul.msk.f32.vlgmr.msrb.gmra.mxu3 %vm525_vm1, %v1121_v63  ;;  %851 = vmatmul.msk.f32.vlgmr.msrb.gmra.mxu1 %vm525_vm1, %v1121_v63 }
 0x113   : > { %v546_v48 = vpop.f32.mrf.mxu0 }
 0x114   : > { %v689_v49 = vsub.f32 %v546_v48, %v963_v20  ;;  %v566_v50 = vpop.f32.mrf.mxu1 }
 0x115   : > { %v690_v51 = vsub.f32 %v566_v50, %v965_v21 }
 0x116   : > { %v697_v52 = vmul.f32 %v689_v49, %v689_v49 }
 0x117   : > { %v698_v53 = vmul.f32 %v690_v51, %v690_v51  ;;  %v586_v54 = vpop.f32.mrf.mxu2 }
 0x118   : > { %v714_v55 = vsel %vm713_vm2, %v697_v52, 0.0  ;;  %v691_v60 = vsub.f32 %v586_v54, %v967_v22 }
 0x119   : > { %v715_v61 = vsel %vm713_vm2, %v698_v53, 0.0 }
 0x11a   : > { %v699_v62 = vmul.f32 %v691_v60, %v691_v60  ;;  %v606_v0 = vpop.f32.mrf.mxu3  ;;  %v716_v1 = vadd.f32 %v715_v61, %v714_v55 }
 0x11b   : > { %v692_v63 = vsub.f32 %v606_v0, %v969_v23  ;;  %v626_v2 = vpop.f32.mrf.mxu0 }
 0x11c   : > { %v717_v20 = vsel %vm713_vm2, %v699_v62, 0.0  ;;  %v693_v3 = vsub.f32 %v626_v2, %v1014_v46  ;;  %v646_v21 = vpop.f32.mrf.mxu1 }
 0x11d   : > { %v718_v4 = vadd.f32 %v717_v20, %v716_v1  ;;  %v700_v5 = vmul.f32 %v692_v63, %v692_v63  ;;  %v694_v6 = vsub.f32 %v646_v21, %v1016_v47 }
 0x11e   : > { %v701_v7 = vmul.f32 %v693_v3, %v693_v3 }
 0x11f   : > { %v719_v22 = vsel %vm713_vm2, %v700_v5, 0.0  ;;  %v702_v8 = vmul.f32 %v694_v6, %v694_v6 }
 0x120   : > { %v720_v58 = vadd.f32 %v719_v22, %v718_v4  ;;  %v721_v9 = vsel %vm713_vm2, %v701_v7, 0.0 }
 0x121   : > { %v723_v23 = vsel %vm713_vm2, %v702_v8, 0.0  ;;  %v666_v10 = vpop.f32.mrf.mxu2 }
 0x122   : > { %v722_v11 = vadd.f32 %v721_v9, %v720_v58  ;;  %v695_v46 = vsub.f32 %v666_v10, %v1028_v56  ;;  %v686_v12 = vpop.f32.mrf.mxu3 }
 0x123   : > { %v696_v13 = vsub.f32 %v686_v12, %v1030_v57 }
 0x124   : > { %v703_v14 = vmul.f32 %v695_v46, %v695_v46  ;;  %v724_v47 = vadd.f32 %v723_v23, %v722_v11 }
 0x125   : > { %v704_v15 = vmul.f32 %v696_v13, %v696_v13 }
 0x126   : > { %v725_v16 = vsel %vm713_vm2, %v703_v14, 0.0 }
 0x127   : > { %v726_v17 = vadd.f32 %v725_v16, %v724_v47  ;;  %v727_v18 = vsel %vm713_vm2, %v704_v15, 0.0 }
 0x129   : > { %v728_v19 = vadd.f32 %v727_v18, %v726_v17 }
 0x12b   : > { %729 = vadd.xlane.f32.xlu2 %v728_v19 }
 0x19e   : > { %v730_v56 = vpop.xlane.xlu2 %729 }
 0x19f   : > { %v731_v24 = vperm.slane %v730_v56, 0 }
 0x1a1   : > { %732 = vst [vmem:[%s313_s11] sm:$0xff] %v731_v24 }
 0x1a2 PF: > { %s18_s24 = sadd.s32 1, %s874_s24  }
 0x1a3   : > { %p15_p6 = scmp.ge.s32.totalorder %s18_s24, 4  }
 0x1a5   :  { %17 = sbr.rel (!%p15_p6) target bundleno = 1 (0x1), region = 95 }

</bundles_post_ra>
